<compile_context>
chip_gen: v7x
topology: tpu7x:2x2x1
jax: 0.10.0
libtpu: 0.0.40
codegen_flags: <defaults>
</compile_context>

<pallas_src>
import functools
import math

import jax
import jax.numpy as jnp
from jax.experimental import pallas as pl
from jax.experimental.pallas import tpu as pltpu


# ----------------------------- Pallas kernels -------------------------------

def _wx_bias_kernel(w_ref, x_ref, b_ref, o_ref):
    # w: (M, K) bf16, x: (K, TN) bf16, b: (M, 1) f32, o: (M, TN) f32
    acc = jnp.dot(w_ref[...], x_ref[...], preferred_element_type=jnp.float32)
    o_ref[...] = (acc + b_ref[...]).astype(o_ref.dtype)


def _wx_bias_relu_kernel(w_ref, x_ref, b_ref, o_ref):
    acc = jnp.dot(w_ref[...], x_ref[...], preferred_element_type=jnp.float32)
    o_ref[...] = jnp.maximum(acc + b_ref[...], 0.0).astype(o_ref.dtype)


def _pixel_mm_kernel(cols_ref, w_ref, o_ref):
    # cols: (K, TN) f32, w: (C, K, TN) f32, o: (C, TN) f32
    # out[c, p] = sum_k cols[k, p] * w[c, k, p]   (per-pixel meta weights)
    cols = cols_ref[...]
    rows = [jnp.sum(cols * w_ref[c], axis=0, keepdims=True)
            for c in range(o_ref.shape[0])]
    o_ref[...] = jnp.concatenate(rows, axis=0).astype(o_ref.dtype)


_MAX_TN = 512                       # pixel tile (lane-dense, multiple of 128)
_VMEM_LIMIT = 32 * 1024 * 1024      # safe on v5e/v6e/v7x


def _rup(x, m):
    return ((x + m - 1) // m) * m


def _choose_tn(p):
    """Pixel-tile size: full dim if small, else 512-wide lane-dense tiles."""
    if p <= _MAX_TN:
        return p, p
    return _MAX_TN, _rup(p, _MAX_TN)


@functools.lru_cache(maxsize=None)
def _get_conv_mm(nb, m, k, pp, tn, relu):
    kern = _wx_bias_relu_kernel if relu else _wx_bias_kernel
    f = pl.pallas_call(
        kern,
        out_shape=jax.ShapeDtypeStruct((nb, m, pp), jnp.float32),
        grid_spec=pltpu.PrefetchScalarGridSpec(
            num_scalar_prefetch=0,
            grid=(nb, pp // tn),
            in_specs=[
                pl.BlockSpec((m, k), lambda n, j: (0, 0)),        # weights (resident)
                pl.BlockSpec((None, k, tn), lambda n, j: (n, 0, j)),  # activations
                pl.BlockSpec((m, 1), lambda n, j: (0, 0)),        # bias
            ],
            out_specs=pl.BlockSpec((None, m, tn), lambda n, j: (n, 0, j)),
        ),
        compiler_params=pltpu.CompilerParams(
            dimension_semantics=("parallel", "parallel"),
            vmem_limit_bytes=_VMEM_LIMIT),
    )
    return jax.jit(f)


@functools.lru_cache(maxsize=None)
def _get_pixel_mm(nb, c, k, pp, tn):
    f = pl.pallas_call(
        _pixel_mm_kernel,
        out_shape=jax.ShapeDtypeStruct((nb, c, pp), jnp.float32),
        grid_spec=pltpu.PrefetchScalarGridSpec(
            num_scalar_prefetch=0,
            grid=(nb, pp // tn),
            in_specs=[
                pl.BlockSpec((None, k, tn), lambda n, j: (n, 0, j)),   # cols
                pl.BlockSpec((c, k, tn), lambda n, j: (0, 0, j)),      # local weights
            ],
            out_specs=pl.BlockSpec((None, c, tn), lambda n, j: (n, 0, j)),
        ),
        compiler_params=pltpu.CompilerParams(
            dimension_semantics=("parallel", "parallel"),
            vmem_limit_bytes=_VMEM_LIMIT),
    )
    return jax.jit(f)


def conv_mm(x_kp, w, b, relu=False):
    """out[n, :, p] = w @ x_kp[n] + b  (optionally ReLU).  x_kp: (N, K, P)."""
    nb, k, p = x_kp.shape
    m = w.shape[0]
    tn, pp = _choose_tn(p)
    xb = x_kp.astype(jnp.bfloat16)
    if pp != p:
        xb = jnp.pad(xb, ((0, 0), (0, 0), (0, pp - p)))
    out = _get_conv_mm(nb, m, k, pp, tn, bool(relu))(
        w.astype(jnp.bfloat16), xb, b.astype(jnp.float32))
    return out[:, :, :p] if pp != p else out


def pixel_matmul(cols, w3):
    """out[n, c, p] = sum_k cols[n, k, p] * w3[c, k, p]."""
    nb, k, p = cols.shape
    c = w3.shape[0]
    tn, pp = _choose_tn(p)
    cols = cols.astype(jnp.float32)
    w3 = w3.astype(jnp.float32)
    if pp != p:
        cols = jnp.pad(cols, ((0, 0), (0, 0), (0, pp - p)))
        w3 = jnp.pad(w3, ((0, 0), (0, 0), (0, pp - p)))
    out = _get_pixel_mm(nb, c, k, pp, tn)(cols, w3)
    return out[:, :, :p] if pp != p else out


# ------------------------------- model glue ---------------------------------

RGB_MEAN = jnp.array([0.4488, 0.4371, 0.404], jnp.float32)   # rgb_std = (1,1,1)


def im2col3x3(x):
    """torch.nn.functional.unfold(x, 3, padding=1): (N,C,H,W) -> (N, C*9, H*W)."""
    n, c, h, w = x.shape
    xp = jnp.pad(x, ((0, 0), (0, 0), (1, 1), (1, 1)))
    patches = [xp[:, :, ki:ki + h, kj:kj + w] for ki in range(3) for kj in range(3)]
    p = jnp.stack(patches, axis=2)           # (N, C, 9, H, W): index = c*9 + ki*3 + kj
    return p.reshape(n, c * 9, h * w)
# TODO(synk): for very large images, fuse im2col into the matmul kernel via an
# in-kernel halo DMA instead of materializing the 9x-blown-up tensor in HBM.


def conv2d_3x3(x4, wm, b, relu=False):
    n, _, h, w = x4.shape
    cols = im2col3x3(x4.astype(jnp.bfloat16))          # (N, cin*9, H*W) bf16
    out = conv_mm(cols, wm, b, relu=relu)              # (N, cout, H*W) f32
    return out.reshape(n, wm.shape[0], h, w)


def conv2d_1x1(x4, wm, b, relu=False):
    n, cin, h, w = x4.shape
    out = conv_mm(x4.reshape(n, cin, h * w), wm, b, relu=relu)
    return out.reshape(n, wm.shape[0], h, w)


def adaptive_conv(x4, p, s, ksize):
    """AdaptiveConv.forward: per-sample, per-output-channel gated conv weights."""
    n, cin, _, _ = x4.shape
    cout = p['wm'].shape[0]
    # tiny per-sample gating MLP: (N, cin+1) -> (N, cout); plain XLA (perf review).
    y = jnp.mean(x4, axis=(2, 3))                                  # AdaptiveAvgPool2d(1)
    prior = jnp.concatenate([y, jnp.full((n, 1), s, jnp.float32)], axis=1)
    hdn = jnp.maximum(prior @ p['aw1_w'].T + p['aw1_b'], 0.0)
    gate = jax.nn.sigmoid(hdn @ p['aw2_w'].T + p['aw2_b'])         # (N, cout)
    zero_b = jnp.zeros((cout, 1), jnp.float32)
    if ksize == 1:
        conv_nb = conv2d_1x1(x4, p['wm'], zero_b)
    else:
        conv_nb = conv2d_3x3(x4, p['wm'], zero_b)
    # scaling the weight per (sample, out-channel) == scaling the unbiased conv output
    return conv_nb * gate[:, :, None, None] + p['b'].reshape(1, cout, 1, 1)


def rdb_forward(x, p, s):
    out = x
    for (wm, b) in p['convs']:
        conv = conv2d_3x3(out, wm, b, relu=True)                   # RDB_Conv
        out = jnp.concatenate([out, conv], axis=1)
    return adaptive_conv(out, p['lff'], s, ksize=1) + x


def pos2weight_T(posT, p):
    """Pos2Weight with weights-as-LHS: posT (6, P) -> (outC*K, P), rows c-major."""
    hdn = conv_mm(posT[None], p['w1'], p['b1'], relu=True)         # (1, 256, P)
    lwT = conv_mm(hdn, p['w2'], p['b2'])                           # (1, outC*K, P)
    return lwT[0]


def rsan_forward(x, pos_mat, params, scale=1.0, rgb_range=1.0):
    scale_int = math.ceil(scale)
    # TODO(synk): repeat_x / sub-pixel output reassembly for scale_int > 1 not
    # implemented (the module hard-codes self.scale = 1, where repeat_x is identity).
    assert scale_int == 1
    scalein = 1.0 / scale
    n, _, h, w = x.shape
    p_pix = h * w

    shift = (rgb_range * RGB_MEAN)[None, :, None, None]
    x = x - shift                                                  # sub_mean (std = 1)

    upimg = im2col3x3(x)                                           # (N, 27, P) f32

    f1 = conv2d_3x3(x, params['sfe1_w'], params['sfe1_b'])
    xf = conv2d_3x3(f1, params['sfe2_w'], params['sfe2_b'])

    rdbs_out = []
    for p_rdb in params['rdbs']:
        xf = rdb_forward(xf, p_rdb, scalein)
        rdbs_out.append(xf)
    out = jnp.concatenate(rdbs_out, axis=1)                        # (N, D*G0, H, W)
    out = conv2d_1x1(out, params['gff0_w'], params['gff0_b'])
    out = adaptive_conv(out, params['gff1'], scalein, ksize=3)
    xr = out + f1                                                  # (N, G0, H, W)

    posT = pos_mat.reshape(p_pix, 6).T                             # (6, P)
    lwT = pos2weight_T(posT, params['p2w'])                        # (3*9*G0, P)
    lw1T = pos2weight_T(posT, params['p2w1'])                      # (3*27,   P)

    cols = im2col3x3(xr)                                           # (N, 9*G0, P) f32
    k0 = cols.shape[1]
    o = pixel_matmul(cols, lwT.reshape(3, k0, p_pix))              # (N, 3, P)
    o1 = pixel_matmul(upimg, lw1T.reshape(3, 27, p_pix))           # (N, 3, P)
    out_img = (o + o1).reshape(n, 3, h, w)
    return out_img + shift                                         # add_mean


# ------------------------- deterministic parameters -------------------------

class KeyGen:
    def __init__(self, seed):
        self._key = jax.random.PRNGKey(seed)

    def __call__(self):
        self._key, sub = jax.random.split(self._key)
        return sub


def init_conv(kg, cout, cin, k):
    # stored pre-reshaped (cout, cin*k*k) bf16 for the weights-as-LHS kernel
    fan = cin * k * k
    w = jax.random.normal(kg(), (cout, cin, k, k), jnp.float32) / math.sqrt(fan)
    b = jax.random.normal(kg(), (cout,), jnp.float32) * 0.01
    return w.reshape(cout, cin * k * k).astype(jnp.bfloat16), b.reshape(cout, 1)


def init_linear_f32(kg, fin, fout):
    # torch-style (out_features, in_features)
    w = jax.random.normal(kg(), (fout, fin), jnp.float32) / math.sqrt(fin)
    b = jax.random.normal(kg(), (fout,), jnp.float32) * 0.01
    return w, b


def init_adaptive_conv(kg, cin, cout, k):
    wm, b = init_conv(kg, cout, cin, k)
    aw1_w, aw1_b = init_linear_f32(kg, cin + 1, cout // 4)
    aw2_w, aw2_b = init_linear_f32(kg, cout // 4, cout)
    return {'wm': wm, 'b': b, 'aw1_w': aw1_w, 'aw1_b': aw1_b,
            'aw2_w': aw2_w, 'aw2_b': aw2_b}


def init_p2w(kg, inC, outC=3, k=3):
    K = k * k * inC
    w1, b1 = init_linear_f32(kg, 6, 256)
    w2, b2 = init_linear_f32(kg, 256, K * outC)
    # Reference output ordering is (k, c)-major; re-order rows to (c, k)-major once
    # at init so the transpose-free meta-upsample path needs no runtime permute.
    # (Pure reparameterization of the same Linear; forward math is identical.)
    w2p = w2.reshape(K, outC, 256).transpose(1, 0, 2).reshape(outC * K, 256)
    b2p = b2.reshape(K, outC).transpose(1, 0).reshape(outC * K)
    return {'w1': w1.astype(jnp.bfloat16), 'b1': b1.reshape(-1, 1),
            'w2': w2p.astype(jnp.bfloat16), 'b2': b2p.reshape(-1, 1)}


def init_rsan_params(kg, G0, ksize, n_colors, D, C, G):
    params = {}
    params['sfe1_w'], params['sfe1_b'] = init_conv(kg, G0, n_colors, ksize)
    params['sfe2_w'], params['sfe2_b'] = init_conv(kg, G0, G0, ksize)
    rdbs = []
    for _ in range(D):
        convs = [init_conv(kg, G, G0 + c * G, ksize) for c in range(C)]
        lff = init_adaptive_conv(kg, G0 + C * G, G0, 1)
        rdbs.append({'convs': convs, 'lff': lff})
    params['rdbs'] = rdbs
    params['gff0_w'], params['gff0_b'] = init_conv(kg, G0, D * G0, 1)
    params['gff1'] = init_adaptive_conv(kg, G0, G0, ksize)
    params['p2w'] = init_p2w(kg, inC=G0, outC=3, k=3)
    params['p2w1'] = init_p2w(kg, inC=3, outC=3, k=3)
    return params


if __name__ == "__main__":
    # args equivalent: G0=16, RDNkSize=3, RDNconfig='A' -> (D,C,G)=(20,6,32),
    # n_colors=3, rgb_range=1.0, scale=1 (the module's hard-coded default).
    G0, ksize, n_colors, rgb_range = 16, 3, 3, 1.0
    D, C, G = 20, 6, 32
    N, H, W = 2, 8, 8

    kg = KeyGen(0)                                   # jax.random.PRNGKey(0)
    params = init_rsan_params(kg, G0, ksize, n_colors, D, C, G)
    x = jax.random.uniform(kg(), (N, n_colors, H, W), jnp.float32) * rgb_range
    pos_mat = jax.random.normal(kg(), (1, H * W, 6), jnp.float32) * 0.1

    fwd = jax.jit(functools.partial(rsan_forward, scale=1.0, rgb_range=rgb_range))
    out = fwd(x, pos_mat, params)
    out = jax.block_until_ready(out)
    assert out.shape == (N, 3, H, W), out.shape
    assert bool(jnp.all(jnp.isfinite(out)))
    print("KERNEL_OK")
</pallas_src>

<mosaic_0001>
module attributes {stable_mosaic.version = 11 : i64} {
  func.func @_wx_bias_kernel(%arg0: i32, %arg1: i32, %arg2: memref<16x27xbf16, #tpu.memory_space<vmem>>, %arg3: memref<1x27x64xbf16, #tpu.memory_space<vmem>>, %arg4: memref<16x1xf32, #tpu.memory_space<vmem>>, %arg5: memref<1x16x64xf32, #tpu.memory_space<vmem>>) attributes {dimension_semantics = [#tpu.dimension_semantics<parallel>, #tpu.dimension_semantics<parallel>], iteration_bounds = array<i64: 2, 1>, scalar_prefetch = 0 : i64, scratch_operands = 0 : i64, tpu.core_type = #tpu.core_type<tc>, window_params = [{pipeline_mode = #tpu.pipeline_mode<synchronous>, transform_indices = @transform_0, window_bounds = array<i64: 16, 27>}, {transform_indices = @transform_1, window_bounds = array<i64: 1, 27, 64>}, {pipeline_mode = #tpu.pipeline_mode<synchronous>, transform_indices = @transform_2, window_bounds = array<i64: 16, 1>}, {transform_indices = @transform_3, window_bounds = array<i64: 1, 16, 64>}]} {
    %c0 = arith.constant 0 : index
    %c0_0 = arith.constant 0 : index
    %0 = vector.load %arg2[%c0, %c0_0] : memref<16x27xbf16, #tpu.memory_space<vmem>>, vector<16x27xbf16>
    %c0_1 = arith.constant 0 : index
    %c0_2 = arith.constant 0 : index
    %c0_3 = arith.constant 0 : index
    %1 = vector.load %arg3[%c0_1, %c0_2, %c0_3] : memref<1x27x64xbf16, #tpu.memory_space<vmem>>, vector<1x27x64xbf16>
    %2 = vector.shape_cast %1 : vector<1x27x64xbf16> to vector<27x64xbf16>
    %cst = arith.constant dense<0.000000e+00> : vector<16x64xf32>
    %3 = tpu.matmul %0, %2, %cst {dimension_numbers = #tpu.dot_dimension_numbers<[1], [0], [0], [1], [0, 0, 1, 1], [], []>} : vector<16x27xbf16>, vector<27x64xbf16>, vector<16x64xf32> -> vector<16x64xf32>
    %c0_4 = arith.constant 0 : index
    %c0_5 = arith.constant 0 : index
    %4 = vector.load %arg4[%c0_4, %c0_5] : memref<16x1xf32, #tpu.memory_space<vmem>>, vector<16x1xf32>
    %5 = vector.broadcast %4 : vector<16x1xf32> to vector<16x64xf32>
    %6 = arith.addf %3, %5 : vector<16x64xf32>
    %c0_6 = arith.constant 0 : index
    %c0_7 = arith.constant 0 : index
    %c0_8 = arith.constant 0 : index
    %7 = vector.load %arg5[%c0_6, %c0_7, %c0_8] : memref<1x16x64xf32, #tpu.memory_space<vmem>>, vector<1x16x64xf32>
    %8 = vector.shape_cast %7 : vector<1x16x64xf32> to vector<16x64xf32>
    %9 = vector.shape_cast %6 : vector<16x64xf32> to vector<1x16x64xf32>
    tpu.vector_store %arg5[%c0_6, %c0_7, %c0_8], %9 {strides = array<i32>} : memref<1x16x64xf32, #tpu.memory_space<vmem>>, vector<1x16x64xf32>,
    return
  }
  func.func @transform_0(%arg0: i32, %arg1: i32) -> (i32, i32) {
    %c0_i32 = arith.constant 0 : i32
    %c0_i32_0 = arith.constant 0 : i32
    %c0_i32_1 = arith.constant 0 : i32
    return %c0_i32, %c0_i32_0 : i32, i32
  }
  func.func @transform_1(%arg0: i32, %arg1: i32) -> (i32, i32, i32) {
    %c0_i32 = arith.constant 0 : i32
    %c0_i32_0 = arith.constant 0 : i32
    return %arg0, %c0_i32, %arg1 : i32, i32, i32
  }
  func.func @transform_2(%arg0: i32, %arg1: i32) -> (i32, i32) {
    %c0_i32 = arith.constant 0 : i32
    %c0_i32_0 = arith.constant 0 : i32
    %c0_i32_1 = arith.constant 0 : i32
    return %c0_i32, %c0_i32_0 : i32, i32
  }
  func.func @transform_3(%arg0: i32, %arg1: i32) -> (i32, i32, i32) {
    %c0_i32 = arith.constant 0 : i32
    %c0_i32_0 = arith.constant 0 : i32
    return %arg0, %c0_i32, %arg1 : i32, i32, i32
  }
}

</mosaic_0001>

<bundles_post_ra>
// kernel: tpu_custom_call.1
= control target key start
LH: loop header
LB: loop body
LE: loop exit
PB: predicated region body
PF: predicated region fallthrough
CT: control target
= control target key end

     0   :  { %8 = vsyncpa [#allocation3], 0  ;;  %s703_s0 = inlined_call_operand.vmem [shape: bf16[16,27], index: 0, kind: input, shape index: {}]   ;;  %s704_s1 = inlined_call_operand.vmem [shape: bf16[2,27,64], index: 1, kind: input, shape index: {}]   ;;  %s705_s2 = inlined_call_operand.vmem [shape: f32[16,1], index: 2, kind: input, shape index: {}]   ;;  %s706_s3 = inlined_call_operand.hbm [shape: f32[2,16,64], index: 3, kind: output, shape index: {}]  }
   0x1   :  { %10 = vsyncpa [#allocation3 + $0x1], 0  ;;  %s579_s12 = smov 0   ;;  %s581_s13 = smov 0  }
   0x2   :  { %s583_s14 = smov 0   ;;  %s585_s15 = smov 0  }
   0x3   :  { %s587_s16 = smov 0   ;;  %s589_s17 = smov 0  }
   0x4 LB: > { %s377_s18 = sadd.s32 4294967295, %s550_s17   ;;  %s378_s19 = sadd.s32 4294967294, %s550_s17   ;;  %s550_s17 = sphi %s589_s17, %s16_s17   ;;  %s546_s16 = sphi %s587_s16, %s713_s16   ;;  %s542_s15 = sphi %s585_s15, %s712_s15   ;;  %s538_s14 = sphi %s583_s14, %s711_s14   ;;  %s534_s13 = sphi %s581_s13, %s710_s13   ;;  %s530_s12 = sphi %s579_s12, %s709_s12  }
   0x5   : > { %s28_s20 = sadd.s32 1, %s546_s16  ;;  %s107_s21 = sadd.s32 1, %s538_s14 }
   0x6   : > { %p30_p0 = scmp.ge.s32.totalorder %s28_s20, 2  ;;  %p117_p1 = scmp.ne.s32.totalorder %s538_s14, %s534_s13 }
   0x7   : > { %p118_p2 = scmp.eq.s32.totalorder %s377_s18, 1  ;;  %p123_p3 = scmp.ne.s32.totalorder %s534_s13, %s530_s12 }
   0x8   : > { %s715_s20 = smov (%p30_p0, %s28_s20), 0  ;;  %p124_p5 = scmp.eq.s32.totalorder %s378_s19, 1 }
   0x9   : > { %p619_p4 = por %p118_p2, %p117_p1  ;;  %s102_s23 = ssub.s32 %s546_s16, %s715_s20 }
   0xa   : > { %p381_p6 = scmp.ge.s32.totalorder %s550_s17, 1  ;;  %p105_p7 = scmp.eq.s32.totalorder %s102_s23, 0 }
   0xb   : > { %p626_p8 = por %p124_p5, %p123_p3  ;;  %p159_p9 = scmp.lt.s32.totalorder %s550_s17, 3 }
   0xc   : > { %s632_s25 = scalar_select %p105_p7, %s538_s14, %s107_s21  }
   0xd   : > { %p160_p10 = pnand %p381_p6, %p159_p9 }
   0xe   : > { %p186_p11 = scmp.lt.s32.totalorder (!%p160_p10), %s542_s15, 1  ;;  %vm233_vm0 = vcmask (!%p160_p10), 1044480   ;;  %v552_v0 = vmov (!%p160_p10), 0.0   ;;  %vm553_vm1 = vmmov (!%p160_p10), 0   ;;  %v201_v1 = vld [vmem:[%s705_s2] sm:$0xff] (!%p160_p10)  ;;  %vm234_vm2 = vcmask (!%p160_p10), 1045504  }
   0xf   : > { %163 = sbr.rel (%p160_p10) target bundleno = 265 (0x109), region = 32  ;;  %399 = vmatprep.subr.bf16.mxu0 (!%p160_p10), %v552_v0  ;;  %403 = vmatprep.mubr.msk.bf16.mxu0 (!%p160_p10), %vm553_vm1, %v552_v0  ;;  %v554_v2 = vmov (!%p160_p10), 65535   ;;  %v555_v4 = vmov (!%p160_p10), 0   ;;  %v202_v5 = vld [vmem:[%s705_s2 + $0x8] sm:$0xff] (!%p160_p10)  ;;  %v471_v10 = vld [vmem:[%s703_s0] sm:$0xff] (!%p160_p10)   ;;  %vm229_vm3 = vcmask (!%p160_p10), 220160  }
  0x10   : > { %v235_v3 = vsel (!%p160_p10), %vm233_vm0, 4294967295, %v554_v2  ;;  %468 = vset.pattern.permute.xlu0 (!%p160_p10), %v555_v4  ;;  %s183_s10 = sand.u32 (!%p160_p10), 1, %s534_s13   ;;  %s395_s21 = sshll.u32 (!%p160_p10), %s542_s15, 8  ;;  %vm281_vm4 = vcmask (!%p160_p10), 523264  }
  0x11   : > { %205 = vperm.xlu0 (!%p160_p10), %468, %v201_v1   ;;  %v236_v7 = vsel (!%p160_p10), %vm234_vm2, %v235_v3, 0  ;;  %s382_s11 = sshll.u32 (!%p160_p10), %s183_s10, 4  ;;  %s655_s27 = scalar_lea.hbm (!%p160_p10), %s706_s3, %s395_s21 }
  0x12   : > { %s185_s18 = scalar_lea.vmem (!%p160_p10), [#allocation2], %s382_s11 }
  0x13   : > { %s299_s19 = sshll.u32 (!%p160_p10), %s185_s18, 4  ;;  %s650_s19 = int_to_ptr.vmem [resolvable:$true] %s299_s19 }
  0x14   : > { %s472_s28 = scalar_lea.vmem (!%p160_p10), %s650_s19, 256 }
  0x15   : > { %210 = vperm.xlu0 (!%p160_p10), %468, %v202_v5   ;;  %p473_p12 = scmp.ne.s32.totalorder (!%p160_p10), %s650_s19, %s472_s28 }
  0x16   : > { %s187_s26 = scalar_select %p186_p11, %s542_s15, 1 }
  0x17   : > { %s657_s15 = scalar_lea.sflag [#allocation3], %s183_s10  ;;  %p474_p13 = pnand %p473_p12, %p619_p4 }
  0x18   : > { %s394_s29 = sshll.u32 %s187_s26, 4 }
  0x19   : > { %s193_s5 = scalar_lea.vmem %s704_s1, %s394_s29  ;;  %p475_p0 = pneg %p474_p13 }
  0x1a   : > { %v469_v6 = vld [vmem:[%s193_s5] sm:$0xff]   ;;  %v470_v8 = vld [vmem:[%s193_s5 + $0x8] sm:$0x3f]   ;;  %s556_s29 = smov [#allocation2]  }
  0x1b   : > { %400 = vmatpush3.bf16.msra.mxu0 %v469_v6  ;;  %v238_v9 = vand.u32 %v470_v8, %v236_v7  ;;  %s476_s30 = sshll.u32 %s556_s29, 4  ;;  %s477_s30 = int_to_ptr.vmem [resolvable:$false] %s476_s30 }
  0x1c   : > { %401 = vmatprep.subr.bf16.mxu0 %v552_v0  ;;  %s478_s4 = scalar_lea.vmem %s477_s30, 512  ;;  %p479_p1 = scmp.lt.s32.totalorder %s650_s19, %s477_s30 }
  0x1d   : > { %p480_p2 = scmp.lt.s32.totalorder %s478_s4, %s472_s28 }
  0x1f   : > { %402 = vmatpush3.bf16.msra.mxu0 %v238_v9  ;;  %p481_p3 = por %p480_p2, %p479_p1 }
  0x21   : > { %p482_p5 = pnand %p481_p3, %p475_p0 }
  0x22   : > { %404 = vmatmul.mubr.msk.bf16.vlgmr.msra.gmra.mrb[0].mxu0 %vm229_vm3, %v471_v10 }
  0x90   : > { %v206_v11 = vpop.permute.xlu0 %205 }
  0x94   : > { %v211_v15 = vpop.permute.xlu0 %210 }
  0xf5   : > { %v274_v12 = vpop.f32.mrb[0].mxu0 }
  0xf6   : > { %v275_v13 = vadd.f32 %v274_v12, %v206_v11  ;;  %v405_v14 = vpop.f32.mrb[1].mxu0 }
  0xf7   : > { %v277_v16 = vpop.f32.mrb[2].mxu0 }
  0xf8   : > { %282 = vst.msk [vmem:[%s185_s18] sm:$0xff] %vm281_vm4, %v275_v13  ;;  %v278_v17 = vadd.f32 %v277_v16, %v211_v15  ;;  %v406_v18 = vpop.f32.mrb[3].mxu0 }
  0xfa   : > { %283 = vst.msk [vmem:[%s185_s18 + $0x8] sm:$0xff] %vm281_vm4, %v278_v17 }
  0xfb   : > { %485 = shalt.err (!%p482_p5)
}
  0xfc   : > { %s486_s5 = scalar_lea.hbm %s655_s27, 256  ;;  %s490_s8 = scalar_lea.hbm %s706_s3, 512 }
  0xfd   : > { %p487_p6 = scmp.ne.s32.totalorder %s655_s27, %s486_s5  ;;  %p491_p10 = scmp.lt.u32.totalorder %s655_s27, %s706_s3 }
  0xfe   : > { %p492_p11 = scmp.lt.u32.totalorder %s490_s8, %s486_s5  ;;  %p494_p13 = scmp.lt.u32.totalorder %s486_s5, %s655_s27 }
  0xff   : > { %p488_p7 = pnand %p487_p6, %p619_p4 }
 0x100   : > { %p493_p12 = por %p492_p11, %p491_p10 }
 0x101   : > { %p489_p9 = pneg %p488_p7 }
 0x102   : > { %p495_p0 = por %p494_p13, %p493_p12 }
 0x104   : > { %p496_p1 = pnand %p495_p0, %p489_p9 }
 0x106   : > { %499 = shalt.err (!%p496_p1)
}
 0x107   : > { %s557_s11 = smov 128   ;;  %s558_s18 = smov 8  }
 0x108   : > { %407 = dma.vmem_to_hbm [thread:$0]  (%p619_p4), %s650_s19, 256, %s655_s27, %s657_s15, %s557_s11, %s557_s11, %s558_s18  }
 0x109 PF: > { %p413_p2 = scmp.ge.s32.totalorder %s550_s17, 2  ;;  %s314_s21 = sand.u32 1, %s530_s12  }
 0x10a   : > { %s315_s23 = scalar_lea.sflag [#allocation3], %s314_s21 }
 0x10b   : > { %p410_p3 = pnand %p413_p2, %p626_p8 }
 0x10d   : > { %525 = dma.done.wait (!%p410_p3), %s315_s23, 256  }
 0x10e   : > { %527 = vsyncadd (!%p410_p3), %s315_s23, 4294967040  ;;  %s16_s17 = sadd.s32 1, %s550_s17   ;;  %s709_s12 = smov %s534_s13 }
 0x10f   : > { %p13_p5 = scmp.ge.s32.totalorder %s16_s17, 4   ;;  %s710_s13 = smov %s538_s14 }
 0x110   : > { %s711_s14 = smov %s632_s25  ;;  %s712_s15 = smov %s546_s16 }
 0x111   : > { %s713_s16 = smov %s715_s20  ;;  %15 = sbr.rel (!%p13_p5) target bundleno = 4 (0x4), region = 67 }
 0x118   :  { %320 = vsyncpa [#allocation3], 1 }
 0x119   :  { %322 = vsyncpa [#allocation3 + $0x1], 1 }

</bundles_post_ra>
